<compile_context>
chip_gen: v6e
topology: v6e:2x2x1
jax: 0.10.0
libtpu: 0.0.40
codegen_flags: <defaults>
</compile_context>

<pallas_src>
import functools

import numpy as np
import jax
import jax.numpy as jnp
from jax import lax
from jax.experimental import pallas as pl
from jax.experimental.pallas import tpu as pltpu

EPS = 1e-5  # nn.BatchNorm1d default eps


def _template_kernel(x_ref, p_ref, o_ref, *, B, F, O, eps):
    x = x_ref[...].astype(jnp.float32)                  # (B, F)

    # Packed parameter buffer rows: 0=gamma, 1=beta, 2=bias (padded to F), 3..3+O = W (O, F)
    gamma = p_ref[0:1, :]                               # (1, F)
    beta = p_ref[1:2, :]                                # (1, F)
    bias = p_ref[2:3, :O]                               # (1, O)
    w = p_ref[3:3 + O, :]                               # (O, F)

    # --- BatchNorm1d training statistics: two batch reductions over x ---
    inv_n = 1.0 / B
    mean = jnp.sum(x, axis=0, keepdims=True) * inv_n            # (1, F)
    ex2 = jnp.sum(x * x, axis=0, keepdims=True) * inv_n         # (1, F)
    var = jnp.maximum(ex2 - mean * mean, 0.0)                   # biased variance

    # --- Fold BN (normalize + affine) into the Linear weights/bias ---
    s = gamma * lax.rsqrt(var + eps)                    # (1, F)
    t = beta - mean * s                                 # (1, F)
    w_eff = w * s                                       # (O, F), scaled columns

    dn = (((1,), (1,)), ((), ()))                       # contract feature dims (x@W.T form)
    b_eff = lax.dot_general(t, w, dn, preferred_element_type=jnp.float32) + bias   # (1, O)
    out = lax.dot_general(x, w_eff, dn, preferred_element_type=jnp.float32) + b_eff  # (B, O)
    o_ref[...] = out.astype(o_ref.dtype)


def pack_params(gamma, beta, w, bias):
    """One-time parameter prep (do NOT call per forward): pack BN affine + Linear
    into a single (3 + O, F) f32 buffer."""
    O, F = w.shape
    assert O <= F, "packing assumes out_features <= in_features (5 <= 10 here)"
    bias_pad = jnp.zeros((1, F), jnp.float32).at[0, :O].set(bias.astype(jnp.float32))
    return jnp.concatenate(
        [gamma.reshape(1, F).astype(jnp.float32),
         beta.reshape(1, F).astype(jnp.float32),
         bias_pad,
         w.astype(jnp.float32)],
        axis=0)                                          # (3 + O, F) == (8, 10)


def template_forward(x, packed, *, out_features):
    """Pallas version of TemplateModel.forward (standard path).

    x: any shape whose numel is a multiple of in_features (flattened like x.view(-1, 10)).
    packed: output of pack_params().
    """
    F = packed.shape[1]
    O = out_features
    x2d = x.reshape(-1, F)                               # matches x.view(-1, 10); contiguous
    B = x2d.shape[0]

    kernel = functools.partial(_template_kernel, B=B, F=F, O=O, eps=EPS)
    cost = pl.CostEstimate(
        flops=2 * B * F * O + 6 * B * F,
        transcendentals=F,                               # rsqrt per feature
        bytes_accessed=4 * (B * F + packed.size + B * O))

    vmem = pl.BlockSpec(memory_space=pltpu.MemorySpace.VMEM)
    return pl.pallas_call(
        kernel,
        out_shape=jax.ShapeDtypeStruct((B, O), jnp.float32),
        in_specs=[vmem, vmem],
        out_specs=vmem,
        cost_estimate=cost,
    )(x2d, packed)


def ref_forward(x, gamma, beta, w, bias):
    """Pure-JAX reference of the same math (train-mode BN -> Linear)."""
    F = w.shape[1]
    x2 = x.reshape(-1, F)
    m = x2.mean(axis=0, keepdims=True)
    v = ((x2 - m) ** 2).mean(axis=0, keepdims=True)      # biased variance
    xh = (x2 - m) / jnp.sqrt(v + EPS)
    y = xh * gamma.reshape(1, -1) + beta.reshape(1, -1)
    return jnp.dot(y, w.T, precision=lax.Precision.HIGHEST) + bias.reshape(1, -1)


if __name__ == "__main__":
    key = jax.random.PRNGKey(0)
    k = jax.random.split(key, 5)

    # Matches TemplateModel.input_array = torch.rand(10, 5, 2)
    x = jax.random.uniform(k[0], (10, 5, 2), jnp.float32)

    F_in, O = 10, 5
    bound = 1.0 / np.sqrt(F_in)
    w = jax.random.uniform(k[1], (O, F_in), jnp.float32, -bound, bound)   # nn.Linear(10, 5)
    bias = jax.random.uniform(k[2], (O,), jnp.float32, -bound, bound)
    gamma = 1.0 + 0.1 * jax.random.normal(k[3], (F_in,), jnp.float32)     # nn.BatchNorm1d(10)
    beta = 0.1 * jax.random.normal(k[4], (F_in,), jnp.float32)

    packed = jax.block_until_ready(pack_params(gamma, beta, w, bias))     # one-time prep

    out = jax.block_until_ready(template_forward(x, packed, out_features=O))
    ref = jax.block_until_ready(ref_forward(x, gamma, beta, w, bias))
    assert out.shape == (10, 5)
    np.testing.assert_allclose(np.asarray(out), np.asarray(ref), rtol=1e-3, atol=1e-3)
    print("KERNEL_OK")
</pallas_src>

<mosaic_0001>
module attributes {stable_mosaic.version = 11 : i64} {
  func.func @_template_kernel(%arg0: memref<10x10xf32, #tpu.memory_space<vmem>>, %arg1: memref<8x10xf32, #tpu.memory_space<vmem>>, %arg2: memref<10x5xf32, #tpu.memory_space<vmem>>) attributes {dimension_semantics = [], scalar_prefetch = 0 : i64, scratch_operands = 0 : i64, tpu.core_type = #tpu.core_type<tc>} {
    %c0 = arith.constant 0 : index
    %c0_0 = arith.constant 0 : index
    %0 = vector.load %arg0[%c0, %c0_0] : memref<10x10xf32, #tpu.memory_space<vmem>>, vector<10x10xf32>
    %c0_1 = arith.constant 0 : index
    %c0_2 = arith.constant 0 : index
    %1 = vector.load %arg1[%c0_1, %c0_2] : memref<8x10xf32, #tpu.memory_space<vmem>>, vector<1x10xf32>
    %c1 = arith.constant 1 : index
    %c0_3 = arith.constant 0 : index
    %2 = vector.load %arg1[%c1, %c0_3] : memref<8x10xf32, #tpu.memory_space<vmem>>, vector<1x10xf32>
    %c2 = arith.constant 2 : index
    %c0_4 = arith.constant 0 : index
    %3 = vector.load %arg1[%c2, %c0_4] : memref<8x10xf32, #tpu.memory_space<vmem>>, vector<1x5xf32>
    %c3 = arith.constant 3 : index
    %c0_5 = arith.constant 0 : index
    %4 = vector.load %arg1[%c3, %c0_5] : memref<8x10xf32, #tpu.memory_space<vmem>>, vector<5x10xf32>
    %cst = arith.constant dense<0.000000e+00> : vector<10xf32>
    %5 = vector.multi_reduction <add>, %0, %cst [0] : vector<10x10xf32> to vector<10xf32>
    %6 = vector.shape_cast %5 : vector<10xf32> to vector<1x10xf32>
    %cst_6 = arith.constant 1.000000e-01 : f32
    %7 = vector.broadcast %cst_6 : f32 to vector<1x10xf32>
    %8 = arith.mulf %6, %7 : vector<1x10xf32>
    %9 = arith.mulf %0, %0 : vector<10x10xf32>
    %cst_7 = arith.constant dense<0.000000e+00> : vector<10xf32>
    %10 = vector.multi_reduction <add>, %9, %cst_7 [0] : vector<10x10xf32> to vector<10xf32>
    %11 = vector.shape_cast %10 : vector<10xf32> to vector<1x10xf32>
    %cst_8 = arith.constant 1.000000e-01 : f32
    %12 = vector.broadcast %cst_8 : f32 to vector<1x10xf32>
    %13 = arith.mulf %11, %12 : vector<1x10xf32>
    %14 = arith.mulf %8, %8 : vector<1x10xf32>
    %15 = arith.subf %13, %14 : vector<1x10xf32>
    %cst_9 = arith.constant 0.000000e+00 : f32
    %16 = vector.broadcast %cst_9 : f32 to vector<1x10xf32>
    %17 = arith.maximumf %15, %16 : vector<1x10xf32>
    %cst_10 = arith.constant 9.99999974E-6 : f32
    %18 = vector.broadcast %cst_10 : f32 to vector<1x10xf32>
    %19 = arith.addf %17, %18 : vector<1x10xf32>
    %20 = math.rsqrt %19 : vector<1x10xf32>
    %21 = arith.mulf %1, %20 : vector<1x10xf32>
    %22 = arith.mulf %8, %21 : vector<1x10xf32>
    %23 = arith.subf %2, %22 : vector<1x10xf32>
    %24 = vector.broadcast %21 : vector<1x10xf32> to vector<5x10xf32>
    %25 = arith.mulf %4, %24 : vector<5x10xf32>
    %cst_11 = arith.constant dense<0.000000e+00> : vector<1x5xf32>
    %26 = tpu.matmul %23, %4, %cst_11 {dimension_numbers = #tpu.dot_dimension_numbers<[1], [1], [0], [0], [0, 0, 1, 0], [], []>} : vector<1x10xf32>, vector<5x10xf32>, vector<1x5xf32> -> vector<1x5xf32>
    %27 = arith.addf %26, %3 : vector<1x5xf32>
    %cst_12 = arith.constant dense<0.000000e+00> : vector<10x5xf32>
    %28 = tpu.matmul %0, %25, %cst_12 {dimension_numbers = #tpu.dot_dimension_numbers<[1], [1], [0], [0], [0, 0, 1, 0], [], []>} : vector<10x10xf32>, vector<5x10xf32>, vector<10x5xf32> -> vector<10x5xf32>
    %29 = vector.broadcast %27 : vector<1x5xf32> to vector<10x5xf32>
    %30 = arith.addf %28, %29 : vector<10x5xf32>
    %c0_13 = arith.constant 0 : index
    %c0_14 = arith.constant 0 : index
    %31 = vector.load %arg2[%c0_13, %c0_14] : memref<10x5xf32, #tpu.memory_space<vmem>>, vector<10x5xf32>
    tpu.vector_store %arg2[%c0_13, %c0_14], %30 {strides = array<i32>} : memref<10x5xf32, #tpu.memory_space<vmem>>, vector<10x5xf32>,
    return
  }
}

</mosaic_0001>

<bundles_post_ra>
// kernel: tpu_custom_call.1
= control target key start
LH: loop header
LB: loop body
LE: loop exit
PB: predicated region body
PF: predicated region fallthrough
CT: control target
= control target key end

     0   :  { %7 = vsyncpa [#allocation3], 0  ;;  %s367_s0 = inlined_call_operand.hbm [shape: f32[10,10], index: 0, kind: input, shape index: {}]   ;;  %s368_s1 = inlined_call_operand.hbm [shape: f32[8,10], index: 1, kind: input, shape index: {}]   ;;  %s369_s2 = inlined_call_operand.vmem [shape: f32[10,5], index: 2, kind: output, shape index: {}]  }
   0x1   :  { %8 = vsyncpa [#allocation5], 0  ;;  %s326_s9 = smov [#allocation2]  }
   0x2   :  { %s14_s10 = sshll.u32 %s326_s9, 4  ;;  %s15_s10 = int_to_ptr.vmem [resolvable:$true] %s14_s10 }
   0x3   :  { %s290_s11 = scalar_lea.vmem %s15_s10, 256  ;;  %p295_p1 = scmp.lt.s32.totalorder %s15_s10, %s15_s10 }
   0x4   :  { %p291_p0 = scmp.ne.s32.totalorder %s15_s10, %s290_s11  ;;  %p296_p2 = scmp.lt.s32.totalorder %s290_s11, %s290_s11 }
   0x6   :  { %p297_p3 = por %p296_p2, %p295_p1 }
   0x8   :  { %p298_p4 = pnand %p297_p3, %p291_p0 }
   0xa   :  { %301 = shalt.err (!%p298_p4)
}
   0xb   :  { %s327_s12 = smov 128   ;;  %s328_s13 = smov 8  }
   0xc   :  { %20 = dma.hbm_to_vmem [thread:$0]  %s367_s0, 256, %s15_s10, [#allocation3], %s327_s12, %s327_s12, %s328_s13  }
   0xd   :  { %s329_s16 = smov [#allocation4]  }
   0xe   :  { %s27_s17 = sshll.u32 %s329_s16, 4  ;;  %s28_s17 = int_to_ptr.vmem [resolvable:$true] %s27_s17 }
   0xf   :  { %s310_s18 = scalar_lea.vmem %s28_s17, 128  ;;  %p315_p6 = scmp.lt.s32.totalorder %s28_s17, %s28_s17 }
  0x10   :  { %p311_p5 = scmp.ne.s32.totalorder %s28_s17, %s310_s18  ;;  %p316_p7 = scmp.lt.s32.totalorder %s310_s18, %s310_s18 }
  0x12   :  { %p317_p8 = por %p316_p7, %p315_p6 }
  0x14   :  { %p318_p9 = pnand %p317_p8, %p311_p5 }
  0x16   :  { %321 = shalt.err (!%p318_p9)
}
  0x17   :  { %30 = dma.hbm_to_vmem [thread:$0]  %s368_s1, 128, %s28_s17, [#allocation5]  }
  0x18   :  { %322 = dma.done.wait [#allocation3], 256  }
  0x19   :  { %323 = vsyncadd [#allocation3], 4294967040 }
  0x1a   :  { %324 = dma.done.wait [#allocation5], 128  }
  0x1b   :  { %325 = vsyncadd [#allocation5], 4294967168  ;;  %v330_v0 = vmov 0.0   ;;  %vm331_vm0 = vmmov 0   ;;  %vm43_vm1 = vcmask 80896   ;;  %vm45_vm2 = vcmask 74752  }
  0x1c   :  { %264 = vmatprep.subr.mxu0 %v330_v0  ;;  %266 = vmatprep.mubr.msk.f32.mxu0 %vm331_vm0, %v330_v0  ;;  %v42_v1 = vld [vmem:[#allocation4 + $0x3] sm:$0x1f]  ;;  %v37_v2 = vld [vmem:[#allocation2] sm:$0xff]  ;;  %v38_v3 = vld [vmem:[#allocation2 + $0x8] sm:$0x3]  ;;  %v75_v30 = vlaneseq  ;;  %vm246_vm3 = vcmask 33792  }
  0x1d   :  { %265 = vmatpush3.xpose.msk.msra.mxu0 %vm43_vm1, %v42_v1  ;;  %v44_v4 = vsel %vm43_vm1, %v37_v2, 0.0  ;;  %v46_v5 = vsel %vm45_vm2, %v38_v3, 0.0  ;;  %v55_v6 = vmul.f32 %v37_v2, %v37_v2  ;;  %v56_v7 = vmul.f32 %v38_v3, %v38_v3  ;;  %271 = vmatprep.mubr.msk.f32.mxu1 %vm43_vm1, %v37_v2  ;;  %v39_v32 = vld [vmem:[#allocation4] sm:$0x1]  ;;  %v40_v36 = vld [vmem:[#allocation4 + $0x1] sm:$0x1] }
  0x1e   :  { %v47_v8 = vadd.f32 %v46_v5, %v44_v4  ;;  %v76_v31 = vshrl.u32 %v75_v30, 7  ;;  %v41_v41 = vld [vmem:[#allocation4 + $0x2] sm:$0x1]  ;;  %vm244_vm4 = vcmask 39936  }
  0x1f   :  { %v57_v9 = vsel %vm43_vm1, %v55_v6, 0.0  ;;  %v58_v10 = vsel %vm45_vm2, %v56_v7, 0.0 }
  0x20   :  { %v48_v11 = vrot.slane %v47_v8, 4  ;;  %v59_v12 = vadd.f32 %v58_v10, %v57_v9  ;;  %v77_v33 = vsub.s32 0, %v76_v31 }
  0x22   :  { %v49_v13 = vadd.f32 %v48_v11, %v47_v8  ;;  %v60_v14 = vrot.slane %v59_v12, 4 }
  0x24   :  { %v50_v15 = vrot.slane %v49_v13, 2  ;;  %v61_v16 = vadd.f32 %v60_v14, %v59_v12 }
  0x26   :  { %v51_v17 = vadd.f32 %v50_v15, %v49_v13  ;;  %v62_v18 = vrot.slane %v61_v16, 2 }
  0x28   :  { %v52_v19 = vrot.slane %v51_v17, 1  ;;  %v63_v20 = vadd.f32 %v62_v18, %v61_v16 }
  0x2a   :  { %v53_v21 = vadd.f32 %v52_v19, %v51_v17  ;;  %v64_v22 = vrot.slane %v63_v20, 1 }
  0x2c   :  { %v54_v23 = vmul.f32 0.1, %v53_v21  ;;  %v65_v24 = vadd.f32 %v64_v22, %v63_v20 }
  0x2e   :  { %v66_v25 = vmul.f32 0.1, %v65_v24  ;;  %v67_v26 = vmul.f32 %v54_v23, %v54_v23 }
  0x30   :  { %v68_v27 = vsub.f32 %v66_v25, %v67_v26 }
  0x32   :  { %v69_v28 = vmax.f32 %v68_v27, 0.0 }
  0x34   :  { %v70_v29 = vadd.f32 1e-05, %v69_v28 }
  0x36   :  { %280 = vrsqrt.f32 %v70_v29 }
  0x43   :  { %v281_v34 = vpop.eup %280 }
  0x44   :  { %v72_v35 = vmul.f32 %v281_v34, %v39_v32 }
  0x46   :  { %v73_v37 = vmul.f32 %v72_v35, %v54_v23  ;;  %v78_v38 = vrot.slane %v72_v35, %v77_v33 }
  0x48   :  { %v74_v39 = vsub.f32 %v40_v36, %v73_v37  ;;  %v79_v40 = vmul.f32 %v78_v38, %v42_v1 }
  0x4a   :  { %267 = vmatmul.mubr.msk.f32.vlgmr.msra.gmra.mxu0 %vm43_vm1, %v74_v39  ;;  %269 = vmatprep.subr.msk.mxu1 %vm43_vm1, %v79_v40 }
  0x4b   :  { %270 = vmatpush3.xpose.msk.msra.mxu1 %vm43_vm1, %v79_v40 }
  0x4e   :  { %272 = vmatmul.mubr.msk.f32.vlgmr.msra.gmra.mxu1 %vm43_vm1, %v38_v3 }
 0x10a   :  { %v152_v42 = vpop.f32.mrf.mxu0 }
 0x10b   :  { %v153_v43 = vadd.f32 %v152_v42, %v41_v41 }
 0x10c   :  { %v268_v44 = vpop.f32.mrf.mxu0 }
 0x10d   :  { %v159_v45 = vrot.slane %v153_v43, %v77_v33 }
 0x10e   :  { %v273_v46 = vpop.f32.mrf.mxu1 }
 0x10f   :  { %v241_v47 = vadd.f32 %v273_v46, %v159_v45 }
 0x110   :  { %v235_v48 = vpop.f32.mrf.mxu1 }
 0x111   :  { %247 = vst.msk [vmem:[%s369_s2 + $0x8] sm:$0x3] %vm246_vm3, %v241_v47  ;;  %v236_v49 = vadd.f32 %v235_v48, %v159_v45 }
 0x113   :  { %245 = vst.msk [vmem:[%s369_s2] sm:$0xff] %vm244_vm4, %v236_v49 }
 0x114   :  { %252 = vsyncpa [#allocation3], 1 }
 0x115   :  { %253 = vsyncpa [#allocation5], 1 }

</bundles_post_ra>
